<compile_context>
chip_gen: v6e
topology: v6e:2x2x1
jax: 0.10.0
libtpu: 0.0.40
codegen_flags: <defaults>
</compile_context>

<pallas_src>
import functools

import jax
import jax.numpy as jnp
from jax import lax
from jax.experimental import pallas as pl
from jax.experimental.pallas import tpu as pltpu


def _round_up(n, m):
    return ((n + m - 1) // m) * m


def _cdiv(a, b):
    return -(-a // b)


def _default_vmem_limit_bytes():
    """Generation-aware VMEM budget: ~80% of per-core VMEM, capped at 100 MiB.
    v5e/v6e (128 MiB) -> ~100 MiB; v7x (64 MiB) -> ~51 MiB with headroom."""
    try:
        cap = int(getattr(pltpu.get_tpu_info(), "vmem_capacity_bytes", 0))
    except Exception:  # pragma: no cover - info query unavailable
        cap = 0
    if cap <= 0:
        return 48 << 20
    return min(int(cap * 0.8), 100 << 20)


def _fused_mlp_kernel(x_ref, *refs, num_layers, matmul_dtype, precision):
    # refs = (w0, b0, w1, b1, ..., w_{L-1}, b_{L-1}, o_ref)
    # x: (TB, D0p); w_i: (D_ip, D_{i+1}p) pre-transposed, stored in matmul_dtype;
    # b_i: (1, D_{i+1}p) f32.
    o_ref = refs[-1]
    h = x_ref[...]
    for i in range(num_layers):
        w = refs[2 * i][...]                      # already matmul_dtype
        b = refs[2 * i + 1][...]                  # f32
        y = jnp.dot(h.astype(matmul_dtype), w,
                    preferred_element_type=jnp.float32,
                    precision=precision)
        y = y + b                                  # bias + ReLU stay f32 (v5e VPU)
        if i < num_layers - 1:
            y = jnp.maximum(y, 0.0)
        h = y
    o_ref[...] = h.astype(o_ref.dtype)


def prepare_fused_params(params, *, use_bf16_matmul=True):
    """One-time layout plumbing.

    Transpose each (Dout, Din) weight to (Din, Dout), zero-pad the output
    (lane) dim to a multiple of 128 and the contraction (sublane) dim to the
    sublane quantum for the first layer / 128 for later layers (they must
    match the previous layer's lane-padded activation width).
    """
    w_dtype = jnp.bfloat16 if use_bf16_matmul else jnp.float32
    sub = 16 if use_bf16_matmul else 8
    fused = []
    for idx, (w, b) in enumerate(params):
        dout, din = w.shape
        din_p = _round_up(din, sub) if idx == 0 else _round_up(din, 128)
        dout_p = _round_up(dout, 128)
        wt = jnp.zeros((din_p, dout_p), w_dtype).at[:din, :dout].set(
            w.T.astype(w_dtype))
        bp = jnp.zeros((1, dout_p), jnp.float32).at[:, :dout].set(
            b.reshape(1, -1).astype(jnp.float32))
        fused.append((wt, bp))
    return fused


def _resident_spec(shape, single_buffer):
    """BlockSpec for a grid-invariant (fully resident) operand."""
    if single_buffer:
        try:
            return pl.BlockSpec(shape, lambda i: (0, 0),
                                pipeline_mode=pl.Buffered(1))
        except (TypeError, AttributeError):
            pass  # older BlockSpec without pipeline_mode: default double-buffer
    return pl.BlockSpec(shape, lambda i: (0, 0))


def _forward_impl(x, *flat_params, num_layers, dout_last, block_b,
                  use_bf16_matmul, vmem_limit_bytes, single_buffer_weights):
    B, Din = x.shape
    din_p = flat_params[0].shape[0]          # first weight's contraction dim
    dout_p_last = flat_params[-2].shape[1]   # last weight's padded output dim

    # Batch tiling: multiple of 8 (f32 sublane); when more than one tile is
    # needed, force an EVEN tile count so v7x's two TensorCores split evenly.
    b_pad8 = _round_up(max(B, 8), 8)
    n_tiles = _cdiv(b_pad8, block_b)
    if n_tiles > 1 and n_tiles % 2 == 1:
        n_tiles += 1
    tb = _round_up(_cdiv(b_pad8, n_tiles), 8)
    b_pad = tb * n_tiles

    x_p = jnp.zeros((b_pad, din_p), jnp.float32).at[:B, :Din].set(
        x.astype(jnp.float32))

    in_specs = [pl.BlockSpec((tb, din_p), lambda i: (i, 0))]
    for p in flat_params:
        in_specs.append(_resident_spec(p.shape, single_buffer_weights))

    kernel = functools.partial(
        _fused_mlp_kernel,
        num_layers=num_layers,
        matmul_dtype=jnp.bfloat16 if use_bf16_matmul else jnp.float32,
        precision=None if use_bf16_matmul else lax.Precision.HIGHEST,
    )

    out_p = pl.pallas_call(
        kernel,
        out_shape=jax.ShapeDtypeStruct((b_pad, dout_p_last), jnp.float32),
        grid=(b_pad // tb,),
        in_specs=in_specs,
        out_specs=pl.BlockSpec((tb, dout_p_last), lambda i: (i, 0)),
        compiler_params=pltpu.CompilerParams(
            dimension_semantics=("parallel",),   # v7x: split batch across TCs
            vmem_limit_bytes=vmem_limit_bytes,
        ),
    )(x_p, *flat_params)

    return out_p[:B, :dout_last]


def make_fused_mlp_forward(params, *, use_bf16_matmul=True, block_b=256,
                           vmem_limit_bytes=None, single_buffer_weights=True):
    """Build a jitted fused forward. Weight prep happens ONCE here; the
    returned callable is x -> relu(...relu(x W0^T + b0)...) W_last^T + b_last
    in a single dispatch (pad + pallas_call + slice fused under jit)."""
    fused = prepare_fused_params(params, use_bf16_matmul=use_bf16_matmul)
    flat = tuple(a for wb in fused for a in wb)
    if vmem_limit_bytes is None:
        vmem_limit_bytes = _default_vmem_limit_bytes()

    impl = functools.partial(
        _forward_impl,
        num_layers=len(params),
        dout_last=params[-1][0].shape[0],
        block_b=block_b,
        use_bf16_matmul=use_bf16_matmul,
        vmem_limit_bytes=vmem_limit_bytes,
        single_buffer_weights=single_buffer_weights,
    )
    forward_jit = jax.jit(impl)
    return lambda x: forward_jit(x, *flat)


def make_simple_mlp_params(key, input_dim, hidden_dim, num_classes, num_layers=3):
    """Mirrors SimpleMLP.__init__ layer-shape construction (PyTorch-style
    uniform(-1/sqrt(fan_in), 1/sqrt(fan_in)) init, deterministic).
    Weights kept PyTorch-shaped (out_features, in_features)."""
    dims = [(input_dim, hidden_dim), (hidden_dim, hidden_dim)]
    last_hidden_dim = hidden_dim
    for i in range(num_layers - 3):
        dims.append((hidden_dim * (i + 1), hidden_dim * (i + 2)))
        last_hidden_dim = hidden_dim * (i + 2)
    dims.append((last_hidden_dim, num_classes))

    params = []
    for (fan_in, fan_out) in dims:
        key, kw, kb = jax.random.split(key, 3)
        bound = 1.0 / jnp.sqrt(jnp.float32(fan_in))
        w = jax.random.uniform(kw, (fan_out, fan_in), jnp.float32, -bound, bound)
        b = jax.random.uniform(kb, (fan_out,), jnp.float32, -bound, bound)
        params.append((w, b))
    return params


def _reference_forward(params, x):
    for (w, b) in params[:-1]:
        x = jnp.maximum(
            jnp.dot(x, w.T, precision=lax.Precision.HIGHEST) + b, 0.0)
    w, b = params[-1]
    return jnp.dot(x, w.T, precision=lax.Precision.HIGHEST) + b


if __name__ == "__main__":
    key = jax.random.PRNGKey(0)

    # --- Case 1: toy shapes matching the original test (grid of 1). ---
    batch, input_dim, hidden_dim, num_classes, num_layers = 2, 16, 32, 10, 3
    key, kx = jax.random.split(key)
    x = jax.random.normal(kx, (batch, input_dim), jnp.float32)
    params = make_simple_mlp_params(key, input_dim, hidden_dim, num_classes,
                                    num_layers)
    ref = _reference_forward(params, x)

    # Default path: bf16 MXU operands, f32 accumulate/epilogue.
    fwd = make_fused_mlp_forward(params)
    out = jax.block_until_ready(fwd(x))
    assert out.shape == (batch, num_classes), out.shape
    assert jnp.allclose(out, ref, atol=3e-2, rtol=3e-2)

    # f32-operand path (Precision.HIGHEST) for a bit-tight check.
    fwd_f32 = make_fused_mlp_forward(params, use_bf16_matmul=False)
    out_f32 = jax.block_until_ready(fwd_f32(x))
    assert jnp.allclose(out_f32, ref, atol=1e-4, rtol=1e-4)

    # --- Case 2: deeper MLP + larger batch exercising the (even) batch grid. ---
    batch2, input_dim2, hidden_dim2, num_classes2, num_layers2 = 300, 48, 64, 10, 4
    key, kx2 = jax.random.split(key)
    x2 = jax.random.normal(kx2, (batch2, input_dim2), jnp.float32)
    params2 = make_simple_mlp_params(key, input_dim2, hidden_dim2, num_classes2,
                                     num_layers2)
    ref2 = _reference_forward(params2, x2)

    fwd2 = make_fused_mlp_forward(params2, block_b=128)  # forces a multi-tile grid
    out2 = jax.block_until_ready(fwd2(x2))
    assert out2.shape == (batch2, num_classes2), out2.shape
    assert jnp.allclose(out2, ref2, atol=5e-2, rtol=5e-2)

    fwd2_f32 = make_fused_mlp_forward(params2, use_bf16_matmul=False, block_b=128)
    out2_f32 = jax.block_until_ready(fwd2_f32(x2))
    assert jnp.allclose(out2_f32, ref2, atol=1e-4, rtol=1e-4)

    print("KERNEL_OK")
</pallas_src>

<mosaic_0001>
module attributes {stable_mosaic.version = 11 : i64} {
  func.func @_fused_mlp_kernel(%arg0: i32, %arg1: memref<8x16xf32, #tpu.memory_space<vmem>>, %arg2: memref<16x128xbf16, #tpu.memory_space<vmem>>, %arg3: memref<1x128xf32, #tpu.memory_space<vmem>>, %arg4: memref<128x128xbf16, #tpu.memory_space<vmem>>, %arg5: memref<1x128xf32, #tpu.memory_space<vmem>>, %arg6: memref<128x128xbf16, #tpu.memory_space<vmem>>, %arg7: memref<1x128xf32, #tpu.memory_space<vmem>>, %arg8: memref<8x128xf32, #tpu.memory_space<vmem>>) attributes {dimension_semantics = [#tpu.dimension_semantics<parallel>], iteration_bounds = array<i64: 1>, scalar_prefetch = 0 : i64, scratch_operands = 0 : i64, tpu.core_type = #tpu.core_type<tc>, window_params = [{transform_indices = @transform_0, window_bounds = array<i64: 8, 16>}, {pipeline_mode = #tpu.pipeline_mode<synchronous>, transform_indices = @transform_1, window_bounds = array<i64: 16, 128>}, {pipeline_mode = #tpu.pipeline_mode<synchronous>, transform_indices = @transform_2, window_bounds = array<i64: 1, 128>}, {pipeline_mode = #tpu.pipeline_mode<synchronous>, transform_indices = @transform_3, window_bounds = array<i64: 128, 128>}, {pipeline_mode = #tpu.pipeline_mode<synchronous>, transform_indices = @transform_4, window_bounds = array<i64: 1, 128>}, {pipeline_mode = #tpu.pipeline_mode<synchronous>, transform_indices = @transform_5, window_bounds = array<i64: 128, 128>}, {pipeline_mode = #tpu.pipeline_mode<synchronous>, transform_indices = @transform_6, window_bounds = array<i64: 1, 128>}, {transform_indices = @transform_7, window_bounds = array<i64: 8, 128>}]} {
    %c0 = arith.constant 0 : index
    %c0_0 = arith.constant 0 : index
    %0 = vector.load %arg1[%c0, %c0_0] : memref<8x16xf32, #tpu.memory_space<vmem>>, vector<8x16xf32>
    %c0_1 = arith.constant 0 : index
    %c0_2 = arith.constant 0 : index
    %1 = vector.load %arg2[%c0_1, %c0_2] : memref<16x128xbf16, #tpu.memory_space<vmem>>, vector<16x128xbf16>
    %c0_3 = arith.constant 0 : index
    %c0_4 = arith.constant 0 : index
    %2 = vector.load %arg3[%c0_3, %c0_4] : memref<1x128xf32, #tpu.memory_space<vmem>>, vector<1x128xf32>
    %3 = arith.truncf %0 : vector<8x16xf32> to vector<8x16xbf16>
    %cst = arith.constant dense<0.000000e+00> : vector<8x128xf32>
    %4 = tpu.matmul %3, %1, %cst {dimension_numbers = #tpu.dot_dimension_numbers<[1], [0], [0], [1], [0, 0, 1, 1], [], []>} : vector<8x16xbf16>, vector<16x128xbf16>, vector<8x128xf32> -> vector<8x128xf32>
    %5 = vector.broadcast %2 : vector<1x128xf32> to vector<8x128xf32>
    %6 = arith.addf %4, %5 : vector<8x128xf32>
    %cst_5 = arith.constant 0.000000e+00 : f32
    %7 = vector.broadcast %cst_5 : f32 to vector<8x128xf32>
    %8 = arith.maximumf %6, %7 : vector<8x128xf32>
    %c0_6 = arith.constant 0 : index
    %c0_7 = arith.constant 0 : index
    %9 = vector.load %arg4[%c0_6, %c0_7] : memref<128x128xbf16, #tpu.memory_space<vmem>>, vector<128x128xbf16>
    %c0_8 = arith.constant 0 : index
    %c0_9 = arith.constant 0 : index
    %10 = vector.load %arg5[%c0_8, %c0_9] : memref<1x128xf32, #tpu.memory_space<vmem>>, vector<1x128xf32>
    %11 = arith.truncf %8 : vector<8x128xf32> to vector<8x128xbf16>
    %cst_10 = arith.constant dense<0.000000e+00> : vector<8x128xf32>
    %12 = tpu.matmul %11, %9, %cst_10 {dimension_numbers = #tpu.dot_dimension_numbers<[1], [0], [0], [1], [0, 0, 1, 1], [], []>} : vector<8x128xbf16>, vector<128x128xbf16>, vector<8x128xf32> -> vector<8x128xf32>
    %13 = vector.broadcast %10 : vector<1x128xf32> to vector<8x128xf32>
    %14 = arith.addf %12, %13 : vector<8x128xf32>
    %cst_11 = arith.constant 0.000000e+00 : f32
    %15 = vector.broadcast %cst_11 : f32 to vector<8x128xf32>
    %16 = arith.maximumf %14, %15 : vector<8x128xf32>
    %c0_12 = arith.constant 0 : index
    %c0_13 = arith.constant 0 : index
    %17 = vector.load %arg6[%c0_12, %c0_13] : memref<128x128xbf16, #tpu.memory_space<vmem>>, vector<128x128xbf16>
    %c0_14 = arith.constant 0 : index
    %c0_15 = arith.constant 0 : index
    %18 = vector.load %arg7[%c0_14, %c0_15] : memref<1x128xf32, #tpu.memory_space<vmem>>, vector<1x128xf32>
    %19 = arith.truncf %16 : vector<8x128xf32> to vector<8x128xbf16>
    %cst_16 = arith.constant dense<0.000000e+00> : vector<8x128xf32>
    %20 = tpu.matmul %19, %17, %cst_16 {dimension_numbers = #tpu.dot_dimension_numbers<[1], [0], [0], [1], [0, 0, 1, 1], [], []>} : vector<8x128xbf16>, vector<128x128xbf16>, vector<8x128xf32> -> vector<8x128xf32>
    %21 = vector.broadcast %18 : vector<1x128xf32> to vector<8x128xf32>
    %22 = arith.addf %20, %21 : vector<8x128xf32>
    %c0_17 = arith.constant 0 : index
    %c0_18 = arith.constant 0 : index
    %23 = vector.load %arg8[%c0_17, %c0_18] : memref<8x128xf32, #tpu.memory_space<vmem>>, vector<8x128xf32>
    tpu.vector_store %arg8[%c0_17, %c0_18], %22 {strides = array<i32>} : memref<8x128xf32, #tpu.memory_space<vmem>>, vector<8x128xf32>,
    return
  }
  func.func @transform_0(%arg0: i32) -> (i32, i32) {
    %c0_i32 = arith.constant 0 : i32
    %c0_i32_0 = arith.constant 0 : i32
    return %arg0, %c0_i32 : i32, i32
  }
  func.func @transform_1(%arg0: i32) -> (i32, i32) {
    %c0_i32 = arith.constant 0 : i32
    %c0_i32_0 = arith.constant 0 : i32
    %c0_i32_1 = arith.constant 0 : i32
    return %c0_i32, %c0_i32_0 : i32, i32
  }
  func.func @transform_2(%arg0: i32) -> (i32, i32) {
    %c0_i32 = arith.constant 0 : i32
    %c0_i32_0 = arith.constant 0 : i32
    %c0_i32_1 = arith.constant 0 : i32
    return %c0_i32, %c0_i32_0 : i32, i32
  }
  func.func @transform_3(%arg0: i32) -> (i32, i32) {
    %c0_i32 = arith.constant 0 : i32
    %c0_i32_0 = arith.constant 0 : i32
    %c0_i32_1 = arith.constant 0 : i32
    return %c0_i32, %c0_i32_0 : i32, i32
  }
  func.func @transform_4(%arg0: i32) -> (i32, i32) {
    %c0_i32 = arith.constant 0 : i32
    %c0_i32_0 = arith.constant 0 : i32
    %c0_i32_1 = arith.constant 0 : i32
    return %c0_i32, %c0_i32_0 : i32, i32
  }
  func.func @transform_5(%arg0: i32) -> (i32, i32) {
    %c0_i32 = arith.constant 0 : i32
    %c0_i32_0 = arith.constant 0 : i32
    %c0_i32_1 = arith.constant 0 : i32
    return %c0_i32, %c0_i32_0 : i32, i32
  }
  func.func @transform_6(%arg0: i32) -> (i32, i32) {
    %c0_i32 = arith.constant 0 : i32
    %c0_i32_0 = arith.constant 0 : i32
    %c0_i32_1 = arith.constant 0 : i32
    return %c0_i32, %c0_i32_0 : i32, i32
  }
  func.func @transform_7(%arg0: i32) -> (i32, i32) {
    %c0_i32 = arith.constant 0 : i32
    %c0_i32_0 = arith.constant 0 : i32
    return %arg0, %c0_i32 : i32, i32
  }
}

</mosaic_0001>

<bundles_post_ra>
// kernel: _forward_impl.1
= control target key start
LH: loop header
LB: loop body
LE: loop exit
PB: predicated region body
PF: predicated region fallthrough
CT: control target
= control target key end

     0   :  { %12 = vsyncpa [#allocation3], 0  ;;  %s593_s0 = inlined_call_operand.vmem [shape: f32[8,16], index: 0, kind: input, shape index: {}]   ;;  %s594_s1 = inlined_call_operand.vmem [shape: bf16[16,128], index: 1, kind: input, shape index: {}]   ;;  %s595_s2 = inlined_call_operand.vmem [shape: f32[1,128], index: 2, kind: input, shape index: {}]   ;;  %s596_s3 = inlined_call_operand.hbm [shape: bf16[128,128], index: 3, kind: input, shape index: {}]   ;;  %s597_s4 = inlined_call_operand.vmem [shape: f32[1,128], index: 4, kind: input, shape index: {}]   ;;  %s598_s5 = inlined_call_operand.hbm [shape: bf16[128,128], index: 5, kind: input, shape index: {}]   ;;  %s599_s6 = inlined_call_operand.vmem [shape: f32[1,128], index: 6, kind: input, shape index: {}]   ;;  %s600_s7 = inlined_call_operand.vmem [shape: f32[8,128], index: 7, kind: output, shape index: {}]  }
   0x1   :  { %13 = vsyncpa [#allocation5], 0  ;;  %s503_s24 = smov [#allocation2]  }
   0x2   :  { %s25_s25 = sshll.u32 %s503_s24, 4  ;;  %s26_s25 = int_to_ptr.vmem [resolvable:$true] %s25_s25 }
   0x3   :  { %s467_s26 = scalar_lea.vmem %s26_s25, 1024  ;;  %p472_p1 = scmp.lt.s32.totalorder %s26_s25, %s26_s25 }
   0x4   :  { %p468_p0 = scmp.ne.s32.totalorder %s26_s25, %s467_s26  ;;  %p473_p2 = scmp.lt.s32.totalorder %s467_s26, %s467_s26 }
   0x6   :  { %p474_p3 = por %p473_p2, %p472_p1 }
   0x8   :  { %p475_p4 = pnand %p474_p3, %p468_p0 }
   0xa   :  { %478 = shalt.err (!%p475_p4)
}
   0xb   :  { %s504_s27 = smov 64   ;;  %s505_s28 = smov 4  }
   0xc   :  { %31 = dma.hbm_to_vmem [thread:$0]  %s596_s3, 1024, %s26_s25, [#allocation3], %s504_s27, %s504_s27, %s505_s28  }
   0xd   :  { %s506_s8 = smov [#allocation4]  }
   0xe   :  { %s39_s9 = sshll.u32 %s506_s8, 4  ;;  %s40_s9 = int_to_ptr.vmem [resolvable:$true] %s39_s9 }
   0xf   :  { %s487_s10 = scalar_lea.vmem %s40_s9, 1024  ;;  %p492_p6 = scmp.lt.s32.totalorder %s40_s9, %s40_s9 }
  0x10   :  { %p488_p5 = scmp.ne.s32.totalorder %s40_s9, %s487_s10  ;;  %p493_p7 = scmp.lt.s32.totalorder %s487_s10, %s487_s10 }
  0x12   :  { %p494_p8 = por %p493_p7, %p492_p6 }
  0x14   :  { %p495_p9 = pnand %p494_p8, %p488_p5 }
  0x16   :  { %498 = shalt.err (!%p495_p9)
}
  0x17   :  { %45 = dma.hbm_to_vmem [thread:$0]  %s598_s5, 1024, %s40_s9, [#allocation5], %s504_s27, %s504_s27, %s505_s28  }
  0x18   :  { %499 = dma.done.wait [#allocation3], 1024  }
  0x19   :  { %500 = vsyncadd [#allocation3], 4294966272 }
  0x1a   :  { %501 = dma.done.wait [#allocation5], 1024  }
  0x1b   :  { %502 = vsyncadd [#allocation5], 4294966272  ;;  %v507_v0 = vmov 0.0   ;;  %vm508_vm0 = vmmov 0   ;;  %v442_v1 = vld [vmem:[%s594_s1] sm:$0xff]   ;;  %vm72_vm1 = vcmask 130048  }
  0x1c   :  { %390 = vmatprep.subr.bf16.mxu0 %v507_v0  ;;  %392 = vmatprep.mubr.msk.bf16.mxu0 %vm508_vm0, %v507_v0  ;;  %v55_v2 = vld [vmem:[%s593_s0] sm:$0xff]  ;;  %v443_v4 = vld [vmem:[#allocation2 + $0x38] sm:$0xff]   ;;  %v444_v5 = vld [vmem:[#allocation2 + $0x30] sm:$0xff]  }
  0x1d   :  { %396 = vmatprep.subr.bf16.mxu1 %v507_v0  ;;  %412 = vmatprep.mubr.msk.bf16.mxu1 %vm508_vm0, %v507_v0  ;;  %v59_v3 = vpack.c.bf16 %v55_v2, %v55_v2  ;;  %v445_v6 = vld [vmem:[#allocation2 + $0x28] sm:$0xff]   ;;  %v446_v7 = vld [vmem:[#allocation2 + $0x20] sm:$0xff]   ;;  %v447_v8 = vld [vmem:[#allocation2 + $0x18] sm:$0xff]  }
  0x1e   :  { %391 = vmatpush3.bf16.msra.mxu0 %v442_v1  ;;  %397 = vmatpush3.bf16.msra.mxu1 %v443_v4  ;;  %v448_v9 = vld [vmem:[#allocation2 + $0x10] sm:$0xff]   ;;  %v449_v10 = vld [vmem:[#allocation2 + $0x8] sm:$0xff]   ;;  %v450_v11 = vld [vmem:[#allocation2] sm:$0xff]  }
  0x1f   :  { %416 = vmatprep.subr.bf16.mxu0 %v507_v0  ;;  %398 = vmatprep.subr.bf16.mxu1 %v507_v0  ;;  %v451_v12 = vld [vmem:[#allocation4 + $0x38] sm:$0xff]   ;;  %v452_v13 = vld [vmem:[#allocation4 + $0x30] sm:$0xff]   ;;  %v453_v14 = vld [vmem:[#allocation4 + $0x28] sm:$0xff]  }
  0x20   :  { %v454_v15 = vld [vmem:[#allocation4 + $0x20] sm:$0xff]   ;;  %v455_v16 = vld [vmem:[#allocation4 + $0x18] sm:$0xff]   ;;  %v456_v17 = vld [vmem:[#allocation4 + $0x10] sm:$0xff]  }
  0x21   :  { %393 = vmatmul.mubr.msk.bf16.vlgmr.msra.gmra.mxu0 %vm72_vm1, %v59_v3  ;;  %v349_v18 = vld [vmem:[%s595_s2] ss:$0 sm:$0xff]  ;;  %v457_v26 = vld [vmem:[#allocation4 + $0x8] sm:$0xff]  }
  0x22   :  { %432 = vmatprep.mubr.msk.bf16.mxu0 %vm508_vm0, %v507_v0  ;;  %399 = vmatpush3.bf16.msra.mxu1 %v444_v5  ;;  %v458_v27 = vld [vmem:[#allocation4] sm:$0xff]  }
  0x23   :  { %400 = vmatprep.subr.bf16.mxu1 %v507_v0  ;;  %417 = vmatpush3.bf16.msra.mxu0 %v451_v12  ;;  %v352_v28 = vld [vmem:[%s597_s4] ss:$0 sm:$0xff] }
  0x24   :  { %418 = vmatprep.subr.bf16.mxu0 %v507_v0  ;;  %v361_v36 = vld [vmem:[%s599_s6] ss:$0 sm:$0xff] }
  0x26   :  { %401 = vmatpush3.bf16.msra.mxu1 %v445_v6 }
  0x27   :  { %402 = vmatprep.subr.bf16.mxu1 %v507_v0  ;;  %419 = vmatpush3.bf16.msra.mxu0 %v452_v13 }
  0x28   :  { %420 = vmatprep.subr.bf16.mxu0 %v507_v0 }
  0x2a   :  { %403 = vmatpush3.bf16.msra.mxu1 %v446_v7 }
  0x2b   :  { %404 = vmatprep.subr.bf16.mxu1 %v507_v0  ;;  %421 = vmatpush3.bf16.msra.mxu0 %v453_v14 }
  0x2c   :  { %422 = vmatprep.subr.bf16.mxu0 %v507_v0 }
  0x2e   :  { %405 = vmatpush3.bf16.msra.mxu1 %v447_v8 }
  0x2f   :  { %406 = vmatprep.subr.bf16.mxu1 %v507_v0  ;;  %423 = vmatpush3.bf16.msra.mxu0 %v454_v15 }
  0x30   :  { %424 = vmatprep.subr.bf16.mxu0 %v507_v0 }
  0x32   :  { %407 = vmatpush3.bf16.msra.mxu1 %v448_v9 }
  0x33   :  { %408 = vmatprep.subr.bf16.mxu1 %v507_v0  ;;  %425 = vmatpush3.bf16.msra.mxu0 %v455_v16 }
  0x34   :  { %426 = vmatprep.subr.bf16.mxu0 %v507_v0 }
  0x36   :  { %409 = vmatpush3.bf16.msra.mxu1 %v449_v10 }
  0x37   :  { %410 = vmatprep.subr.bf16.mxu1 %v507_v0  ;;  %427 = vmatpush3.bf16.msra.mxu0 %v456_v17 }
  0x38   :  { %428 = vmatprep.subr.bf16.mxu0 %v507_v0 }
  0x3a   :  { %411 = vmatpush3.bf16.msra.mxu1 %v450_v11 }
  0x3b   :  { %429 = vmatpush3.bf16.msra.mxu0 %v457_v26 }
  0x3c   :  { %430 = vmatprep.subr.bf16.mxu0 %v507_v0 }
  0x3f   :  { %431 = vmatpush3.bf16.msra.mxu0 %v458_v27 }
  0xe1   :  { %v110_v19 = vpop.f32.mrf.mxu0 }
  0xe2   :  { %v111_v20 = vadd.f32 %v349_v18, %v110_v19 }
  0xe3   :  { %v394_v21 = vpop.f32.mrf.mxu0 }
  0xe4   :  { %v116_v22 = vmax.f32 %v111_v20, 0.0 }
  0xe5   :  { %v113_v23 = vpop.f32.mrf.mxu0 }
  0xe6   :  { %v134_v24 = vpack.c.bf16 %v116_v22, %v116_v22 }
  0xe7   :  { %v395_v25 = vpop.f32.mrf.mxu0 }
  0xe8   :  { %413 = vmatmul.mubr.bf16.vlgmr.msra.gmra.mxu1 %v134_v24 }
 0x1a8   :  { %v223_v29 = vpop.f32.mrf.mxu1 }
 0x1a9   :  { %v224_v30 = vadd.f32 %v352_v28, %v223_v29 }
 0x1aa   :  { %v414_v31 = vpop.f32.mrf.mxu1 }
 0x1ab   :  { %v229_v32 = vmax.f32 %v224_v30, 0.0 }
 0x1ac   :  { %v226_v33 = vpop.f32.mrf.mxu1 }
 0x1ad   :  { %v247_v34 = vpack.c.bf16 %v229_v32, %v229_v32 }
 0x1ae   :  { %v415_v35 = vpop.f32.mrf.mxu1 }
 0x1af   :  { %433 = vmatmul.mubr.bf16.vlgmr.msra.gmra.mxu0 %v247_v34 }
 0x26f   :  { %v336_v37 = vpop.f32.mrf.mxu0 }
 0x270   :  { %v337_v38 = vadd.f32 %v361_v36, %v336_v37 }
 0x271   :  { %v434_v39 = vpop.f32.mrf.mxu0 }
 0x272   :  { %342 = vst [vmem:[%s600_s7] sm:$0xff] %v337_v38 }
 0x273   :  { %v339_v40 = vpop.f32.mrf.mxu0 }
 0x275   :  { %v435_v41 = vpop.f32.mrf.mxu0 }
 0x276   :  { %347 = vsyncpa [#allocation3], 1 }
 0x277   :  { %348 = vsyncpa [#allocation5], 1 }

</bundles_post_ra>
